<compile_context>
chip_gen: v5e
topology: v5e:2x2
jax: 0.10.0
libtpu: 0.0.40
codegen_flags: <defaults>
</compile_context>

<pallas_src>
import functools

import numpy as np
import jax
import jax.numpy as jnp
from jax.experimental import pallas as pl
from jax.experimental.pallas import tpu as pltpu


def _round_up(x, m):
    return ((x + m - 1) // m) * m


def _attention_kernel(num_heads, head_dim, window_size, q_tile, k_win,
                      k0_aligned, matmul_dtype,
                      # scalar-prefetch
                      k0_ref,
                      # inputs
                      xq_ref, xk_ref, xv_ref, pad_ref,
                      wq_ref, bq_ref, wkv_ref, bkv_ref, wo_ref, bo_ref,
                      # outputs
                      out_ref, attn_ref,
                      # scratch
                      k_scr, v_scr, ctx_scr):
    H, Dh, W, Tq, Lk = num_heads, head_dim, window_size, q_tile, k_win
    qi = pl.program_id(1)

    def mm(a, b):
        return jnp.dot(a.astype(matmul_dtype), b.astype(matmul_dtype),
                       preferred_element_type=jnp.float32)

    # ---- Project K and V for the whole sequence once per batch element. ----
    # (K/V activation & weight blocks keep the same block index across the
    #  query-tile axis, so they stay resident and are not re-DMA'd.)
    @pl.when(qi == 0)
    def _():
        k_scr[...] = mm(xk_ref[0], wkv_ref[0]) + bkv_ref[0]
        v_scr[...] = mm(xv_ref[0], wkv_ref[1]) + bkv_ref[1]

    # ---- Q projection for this query tile (1/sqrt(Dh) folded into wq/bq). ---
    q = mm(xq_ref[0], wq_ref[...]) + bq_ref[...]            # (Tq, E) f32

    # ---- Banded key window for this query tile. ----
    k0 = k0_ref[qi]
    if k0_aligned:
        k0 = pl.multiple_of(k0, 8)
    k_rows = k_scr[pl.ds(k0, Lk), :].astype(matmul_dtype)    # (Lk, E)
    v_rows = v_scr[pl.ds(k0, Lk), :].astype(matmul_dtype)    # (Lk, E)

    # ---- Combined additive mask (window band + key padding), once per tile. -
    row0 = qi * Tq
    rows = row0 + jax.lax.broadcasted_iota(jnp.int32, (Tq, Lk), 0)
    cols = k0 + jax.lax.broadcasted_iota(jnp.int32, (Tq, Lk), 1)
    outside = jnp.abs(rows - cols) > W
    padded = pad_ref[0] > 0.5                                # (1, Lk)
    bias = jnp.where(jnp.logical_or(outside, padded), -10000.0, 0.0)

    q_c = q.astype(matmul_dtype)
    for h in range(H):                                       # static unroll
        sl = slice(h * Dh, (h + 1) * Dh)
        s = jax.lax.dot_general(q_c[:, sl], k_rows[:, sl],
                                (((1,), (1,)), ((), ())),
                                preferred_element_type=jnp.float32) + bias
        m = jnp.max(s, axis=-1, keepdims=True)
        e = jnp.exp(s - m)
        denom = jnp.sum(e, axis=-1, keepdims=True)
        w = e * pl.reciprocal(denom, approx=True) + 1e-6     # softmax + 1e-6
        attn_ref[0, h] = w
        # lane-dense context slab (avoids per-head concatenate)
        ctx_scr[:, sl] = jnp.dot(w.astype(matmul_dtype), v_rows[:, sl],
                                 preferred_element_type=jnp.float32)

    out = mm(ctx_scr[...], wo_ref[...]) + bo_ref[...]
    # Final NaN fallback -> original `value` rows (no-op for finite inputs).
    row0i = pl.multiple_of(row0, 8) if (Tq % 8 == 0) else row0
    v_orig = xv_ref[0, pl.ds(row0i, Tq), :]
    out = jnp.where(jnp.isnan(out), v_orig, out)
    out_ref[0] = out.astype(out_ref.dtype)


def restricted_self_attention(query, key, value, key_padding_mask, params,
                              num_heads, window_size, q_tile=None,
                              matmul_dtype=jnp.float32):
    B, S, E = query.shape
    H = num_heads
    assert E % H == 0
    Dh = E // H
    W = int(window_size)

    # ---- query tiling (second grid axis) ----
    if q_tile is None:
        q_tile = 128 if (S > 128 and S % 128 == 0) else S
    Tq = int(q_tile)
    assert S % Tq == 0
    nq = S // Tq

    # ---- banded key window (static length, per-tile offset) ----
    Lk = min(S, _round_up(Tq + 2 * W + 7, 128))
    k0_list = []
    for qi in range(nq):
        start = max(0, qi * Tq - W)
        start = (start // 8) * 8          # sublane-align the window start
        start = min(start, S - Lk)
        k0_list.append(int(start))
    k0_arr = jnp.asarray(k0_list, dtype=jnp.int32)
    k0_aligned = (S - Lk) % 8 == 0

    # ---- per-tile key-padding slice: (B*nq, 1, Lk), 1.0 == padded ----
    if key_padding_mask is None:
        pad_f = jnp.zeros((B, S), jnp.float32)
    else:
        pad_f = key_padding_mask.astype(jnp.float32)
    pad_tiles = jnp.stack([pad_f[:, k0:k0 + Lk] for k0 in k0_list], axis=1)
    pad_tiles = pad_tiles.reshape(B * nq, 1, Lk)

    # ---- parameters: fold softmax scale into Wq/bq, stack K/V weight stream -
    scale = float(Dh) ** -0.5
    wq = params["wq"].T * scale
    bq = params["bq"] * scale
    wkv = jnp.stack([params["wk"].T, params["wv"].T], axis=0)     # (2, E, E)
    bkv = jnp.stack([params["bk"], params["bv"]], axis=0)         # (2, 1, E)
    wo = params["wo"].T
    bo = params["bo"]

    kernel = functools.partial(_attention_kernel, H, Dh, W, Tq, Lk,
                               k0_aligned, matmul_dtype)

    # ---- VMEM budget (sized for v7x's 64 MiB physical VMEM) ----
    est_bytes = 4 * (
        2 * Tq * E              # query block (double-buffered)
        + 4 * S * E             # key + value blocks (double-buffered)
        + 2 * Lk                # pad tile
        + 2 * (4 * E * E + 4 * E)   # projection weights + biases
        + 2 * S * E + Tq * E    # K/V/ctx VMEM scratch
        + 2 * Tq * E            # out block (double-buffered)
        + 2 * H * Tq * Lk       # attn band block (double-buffered)
    )
    vmem_limit = int(min(64 * 1024 * 1024, max(32 * 1024 * 1024, 2 * est_bytes)))

    grid_spec = pltpu.PrefetchScalarGridSpec(
        num_scalar_prefetch=1,
        grid=(B, nq),
        in_specs=[
            pl.BlockSpec((1, Tq, E), lambda b, qi, k0: (b, qi, 0)),     # query
            pl.BlockSpec((1, S, E), lambda b, qi, k0: (b, 0, 0)),       # key
            pl.BlockSpec((1, S, E), lambda b, qi, k0: (b, 0, 0)),       # value
            pl.BlockSpec((1, 1, Lk), lambda b, qi, k0: (b * nq + qi, 0, 0)),
            pl.BlockSpec((E, E), lambda b, qi, k0: (0, 0)),             # wq
            pl.BlockSpec((1, E), lambda b, qi, k0: (0, 0)),             # bq
            pl.BlockSpec((2, E, E), lambda b, qi, k0: (0, 0, 0)),       # wkv
            pl.BlockSpec((2, 1, E), lambda b, qi, k0: (0, 0, 0)),       # bkv
            pl.BlockSpec((E, E), lambda b, qi, k0: (0, 0)),             # wo
            pl.BlockSpec((1, E), lambda b, qi, k0: (0, 0)),             # bo
        ],
        out_specs=(
            pl.BlockSpec((1, Tq, E), lambda b, qi, k0: (b, qi, 0)),
            pl.BlockSpec((1, H, Tq, Lk), lambda b, qi, k0: (b * nq + qi, 0, 0, 0)),
        ),
        scratch_shapes=[pltpu.VMEM((S, E), jnp.float32),    # projected K
                        pltpu.VMEM((S, E), jnp.float32),    # projected V
                        pltpu.VMEM((Tq, E), jnp.float32)],  # context slab
    )

    out, band = pl.pallas_call(
        kernel,
        out_shape=(jax.ShapeDtypeStruct((B, S, E), jnp.float32),
                   jax.ShapeDtypeStruct((B * nq, H, Tq, Lk), jnp.float32)),
        grid_spec=grid_spec,
        compiler_params=pltpu.CompilerParams(
            dimension_semantics=("parallel", "arbitrary"),
            vmem_limit_bytes=vmem_limit),
    )(k0_arr, query, key, value, pad_tiles, wq, bq, wkv, bkv, wo, bo)

    # Scatter the attention band back into the full (B, H, S, S) array.
    # Out-of-band entries are exactly softmax(-1e4)->0 plus 1e-6.
    band = band.reshape(B, nq, H, Tq, Lk)
    attn = jnp.full((B, H, S, S), 1e-6, jnp.float32)
    for qi in range(nq):
        k0 = k0_list[qi]
        attn = attn.at[:, :, qi * Tq:(qi + 1) * Tq, k0:k0 + Lk].set(band[:, qi])
    return out, attn


def init_params(key, embed_dim, gain=0.1):
    """xavier_uniform_(weight, gain=0.1), zeros_(bias) — torch Linear layout (out,in)."""
    bound = gain * np.sqrt(6.0 / (embed_dim + embed_dim))
    ks = jax.random.split(key, 4)

    def w(k):
        return jax.random.uniform(k, (embed_dim, embed_dim), jnp.float32,
                                  -bound, bound)

    zeros = jnp.zeros((1, embed_dim), jnp.float32)
    return dict(wq=w(ks[0]), wk=w(ks[1]), wv=w(ks[2]), wo=w(ks[3]),
                bq=zeros, bk=zeros, bv=zeros, bo=zeros)


def reference(query, key, value, key_padding_mask, params, num_heads, window_size):
    """Pure-JAX mirror of the PyTorch forward, for verification."""
    B, S, E = query.shape
    Dh = E // num_heads
    q = query @ params["wq"].T + params["bq"]
    k = key @ params["wk"].T + params["bk"]
    v = value @ params["wv"].T + params["bv"]

    def split(x):
        return x.reshape(B, S, num_heads, Dh).transpose(0, 2, 1, 3)

    qh, kh, vh = split(q), split(k), split(v)
    scores = jnp.einsum("bhqd,bhkd->bhqk", qh, kh) * (float(Dh) ** -0.5)
    i = jnp.arange(S)[:, None]
    j = jnp.arange(S)[None, :]
    outside = jnp.abs(i - j) > window_size
    scores = jnp.where(outside[None, None], -10000.0, scores)
    scores = jnp.where(key_padding_mask[:, None, None, :], -10000.0, scores)
    scores = jnp.where(jnp.isnan(scores), -10000.0, scores)
    w = jax.nn.softmax(scores, axis=-1) + 1e-6
    w = jnp.where(jnp.isnan(w), 1.0 / S, w)
    ctx = jnp.einsum("bhqk,bhkd->bhqd", w, vh).transpose(0, 2, 1, 3).reshape(B, S, E)
    out = ctx @ params["wo"].T + params["bo"]
    out = jnp.where(jnp.isnan(out), value, out)
    return out, w


if __name__ == "__main__":
    def run_case(B, S, E, H, W, seed, matmul_dtype, rtol, atol, pad_last):
        root = jax.random.PRNGKey(seed)
        k_p, k_q, k_k, k_v = jax.random.split(root, 4)
        params = init_params(k_p, E)
        query = jax.random.normal(k_q, (B, S, E), jnp.float32)
        key_in = jax.random.normal(k_k, (B, S, E), jnp.float32)
        value = jax.random.normal(k_v, (B, S, E), jnp.float32)
        # key_padding_mask: True == padded (last `pad_last` keys of batch 1)
        key_padding_mask = jnp.zeros((B, S), jnp.bool_).at[1, S - pad_last:].set(True)

        out, attn = restricted_self_attention(query, key_in, value,
                                              key_padding_mask, params, H, W,
                                              matmul_dtype=matmul_dtype)
        out, attn = jax.block_until_ready((out, attn))

        ref_out, ref_attn = reference(query, key_in, value, key_padding_mask,
                                      params, H, W)
        assert out.shape == (B, S, E) and attn.shape == (B, H, S, S)
        # Tolerances account for the approximate (EUP) reciprocal in the
        # softmax and (for the second case) bf16 MXU operands.
        np.testing.assert_allclose(np.asarray(out), np.asarray(ref_out),
                                   rtol=rtol, atol=atol)
        np.testing.assert_allclose(np.asarray(attn), np.asarray(ref_attn),
                                   rtol=rtol, atol=atol)

    # Small config (module-consistent shapes): f32 matmuls.
    run_case(B=2, S=8, E=32, H=4, W=2, seed=0, matmul_dtype=jnp.float32,
             rtol=1e-2, atol=1e-3, pad_last=2)
    # Larger config exercising query tiling + banded key window + bf16 MXU path.
    run_case(B=2, S=512, E=128, H=4, W=16, seed=1, matmul_dtype=jnp.bfloat16,
             rtol=4e-2, atol=4e-3, pad_last=8)

    print("KERNEL_OK")
</pallas_src>

<mosaic_0001>
module attributes {stable_mosaic.version = 11 : i64} {
  func.func @_attention_kernel(%arg0: i32, %arg1: i32, %arg2: memref<1xi32, #tpu.memory_space<smem>>, %arg3: memref<1x8x32xf32, #tpu.memory_space<vmem>>, %arg4: memref<1x8x32xf32, #tpu.memory_space<vmem>>, %arg5: memref<1x8x32xf32, #tpu.memory_space<vmem>>, %arg6: memref<1x1x8xf32, #tpu.memory_space<vmem>>, %arg7: memref<32x32xf32, #tpu.memory_space<vmem>>, %arg8: memref<1x32xf32, #tpu.memory_space<vmem>>, %arg9: memref<2x32x32xf32, #tpu.memory_space<vmem>>, %arg10: memref<2x1x32xf32, #tpu.memory_space<vmem>>, %arg11: memref<32x32xf32, #tpu.memory_space<vmem>>, %arg12: memref<1x32xf32, #tpu.memory_space<vmem>>, %arg13: memref<1x8x32xf32, #tpu.memory_space<vmem>>, %arg14: memref<1x4x8x8xf32, #tpu.memory_space<vmem>>, %arg15: memref<8x32xf32, #tpu.memory_space<vmem>>, %arg16: memref<8x32xf32, #tpu.memory_space<vmem>>, %arg17: memref<8x32xf32, #tpu.memory_space<vmem>>) attributes {dimension_semantics = [#tpu.dimension_semantics<parallel>, #tpu.dimension_semantics<arbitrary>], iteration_bounds = array<i64: 2, 1>, scalar_prefetch = 1 : i64, scratch_operands = 3 : i64, tpu.core_type = #tpu.core_type<tc>, window_params = [{transform_indices = @transform_0, window_bounds = array<i64: 1, 8, 32>}, {transform_indices = @transform_1, window_bounds = array<i64: 1, 8, 32>}, {transform_indices = @transform_2, window_bounds = array<i64: 1, 8, 32>}, {transform_indices = @transform_3, window_bounds = array<i64: 1, 1, 8>}, {pipeline_mode = #tpu.pipeline_mode<synchronous>, transform_indices = @transform_4, window_bounds = array<i64: 32, 32>}, {pipeline_mode = #tpu.pipeline_mode<synchronous>, transform_indices = @transform_5, window_bounds = array<i64: 1, 32>}, {pipeline_mode = #tpu.pipeline_mode<synchronous>, transform_indices = @transform_6, window_bounds = array<i64: 2, 32, 32>}, {pipeline_mode = #tpu.pipeline_mode<synchronous>, transform_indices = @transform_7, window_bounds = array<i64: 2, 1, 32>}, {pipeline_mode = #tpu.pipeline_mode<synchronous>, transform_indices = @transform_8, window_bounds = array<i64: 32, 32>}, {pipeline_mode = #tpu.pipeline_mode<synchronous>, transform_indices = @transform_9, window_bounds = array<i64: 1, 32>}, {transform_indices = @transform_10, window_bounds = array<i64: 1, 8, 32>}, {transform_indices = @transform_11, window_bounds = array<i64: 1, 4, 8, 8>}]} {
    %c0_i32 = arith.constant 0 : i32
    %0 = arith.cmpi eq, %arg1, %c0_i32 : i32
    %1 = arith.extui %0 : i1 to i32
    %c0_i32_0 = arith.constant 0 : i32
    %2 = arith.cmpi ne, %1, %c0_i32_0 : i32
    scf.if %2 {
      %c0_65 = arith.constant 0 : index
      %c0_66 = arith.constant 0 : index
      %c0_67 = arith.constant 0 : index
      %140 = vector.load %arg4[%c0_65, %c0_66, %c0_67] : memref<1x8x32xf32, #tpu.memory_space<vmem>>, vector<1x8x32xf32>
      %141 = vector.shape_cast %140 : vector<1x8x32xf32> to vector<8x32xf32>
      %c0_68 = arith.constant 0 : index
      %c0_69 = arith.constant 0 : index
      %c0_70 = arith.constant 0 : index
      %142 = vector.load %arg9[%c0_68, %c0_69, %c0_70] : memref<2x32x32xf32, #tpu.memory_space<vmem>>, vector<1x32x32xf32>
      %143 = vector.shape_cast %142 : vector<1x32x32xf32> to vector<32x32xf32>
      %cst_71 = arith.constant dense<0.000000e+00> : vector<8x32xf32>
      %144 = tpu.matmul %141, %143, %cst_71 {dimension_numbers = #tpu.dot_dimension_numbers<[1], [0], [0], [1], [0, 0, 1, 1], [], []>} : vector<8x32xf32>, vector<32x32xf32>, vector<8x32xf32> -> vector<8x32xf32>
      %c0_72 = arith.constant 0 : index
      %c0_73 = arith.constant 0 : index
      %c0_74 = arith.constant 0 : index
      %145 = vector.load %arg10[%c0_72, %c0_73, %c0_74] : memref<2x1x32xf32, #tpu.memory_space<vmem>>, vector<1x1x32xf32>
      %146 = vector.shape_cast %145 : vector<1x1x32xf32> to vector<1x32xf32>
      %147 = vector.broadcast %146 : vector<1x32xf32> to vector<8x32xf32>
      %148 = arith.addf %144, %147 : vector<8x32xf32>
      %c0_75 = arith.constant 0 : index
      %c0_76 = arith.constant 0 : index
      %149 = vector.load %arg15[%c0_75, %c0_76] : memref<8x32xf32, #tpu.memory_space<vmem>>, vector<8x32xf32>
      tpu.vector_store %arg15[%c0_75, %c0_76], %148 {strides = array<i32>} : memref<8x32xf32, #tpu.memory_space<vmem>>, vector<8x32xf32>,
      %c0_77 = arith.constant 0 : index
      %c0_78 = arith.constant 0 : index
      %c0_79 = arith.constant 0 : index
      %150 = vector.load %arg5[%c0_77, %c0_78, %c0_79] : memref<1x8x32xf32, #tpu.memory_space<vmem>>, vector<1x8x32xf32>
      %151 = vector.shape_cast %150 : vector<1x8x32xf32> to vector<8x32xf32>
      %c1_80 = arith.constant 1 : index
      %c0_81 = arith.constant 0 : index
      %c0_82 = arith.constant 0 : index
      %152 = vector.load %arg9[%c1_80, %c0_81, %c0_82] : memref<2x32x32xf32, #tpu.memory_space<vmem>>, vector<1x32x32xf32>
      %153 = vector.shape_cast %152 : vector<1x32x32xf32> to vector<32x32xf32>
      %cst_83 = arith.constant dense<0.000000e+00> : vector<8x32xf32>
      %154 = tpu.matmul %151, %153, %cst_83 {dimension_numbers = #tpu.dot_dimension_numbers<[1], [0], [0], [1], [0, 0, 1, 1], [], []>} : vector<8x32xf32>, vector<32x32xf32>, vector<8x32xf32> -> vector<8x32xf32>
      %c1_84 = arith.constant 1 : index
      %c0_85 = arith.constant 0 : index
      %c0_86 = arith.constant 0 : index
      %155 = vector.load %arg10[%c1_84, %c0_85, %c0_86] : memref<2x1x32xf32, #tpu.memory_space<vmem>>, vector<1x1x32xf32>
      %156 = vector.shape_cast %155 : vector<1x1x32xf32> to vector<1x32xf32>
      %157 = vector.broadcast %156 : vector<1x32xf32> to vector<8x32xf32>
      %158 = arith.addf %154, %157 : vector<8x32xf32>
      %c0_87 = arith.constant 0 : index
      %c0_88 = arith.constant 0 : index
      %159 = vector.load %arg16[%c0_87, %c0_88] : memref<8x32xf32, #tpu.memory_space<vmem>>, vector<8x32xf32>
      tpu.vector_store %arg16[%c0_87, %c0_88], %158 {strides = array<i32>} : memref<8x32xf32, #tpu.memory_space<vmem>>, vector<8x32xf32>,
    } else {
    }
    %c0 = arith.constant 0 : index
    %c0_1 = arith.constant 0 : index
    %c0_2 = arith.constant 0 : index
    %3 = vector.load %arg3[%c0, %c0_1, %c0_2] : memref<1x8x32xf32, #tpu.memory_space<vmem>>, vector<1x8x32xf32>
    %4 = vector.shape_cast %3 : vector<1x8x32xf32> to vector<8x32xf32>
    %c0_3 = arith.constant 0 : index
    %c0_4 = arith.constant 0 : index
    %5 = vector.load %arg7[%c0_3, %c0_4] : memref<32x32xf32, #tpu.memory_space<vmem>>, vector<32x32xf32>
    %cst = arith.constant dense<0.000000e+00> : vector<8x32xf32>
    %6 = tpu.matmul %4, %5, %cst {dimension_numbers = #tpu.dot_dimension_numbers<[1], [0], [0], [1], [0, 0, 1, 1], [], []>} : vector<8x32xf32>, vector<32x32xf32>, vector<8x32xf32> -> vector<8x32xf32>
    %c0_5 = arith.constant 0 : index
    %c0_6 = arith.constant 0 : index
    %7 = vector.load %arg8[%c0_5, %c0_6] : memref<1x32xf32, #tpu.memory_space<vmem>>, vector<1x32xf32>
    %8 = vector.broadcast %7 : vector<1x32xf32> to vector<8x32xf32>
    %9 = arith.addf %6, %8 : vector<8x32xf32>
    %10 = arith.index_cast %arg1 : i32 to index
    %11 = memref.load %arg2[%10] : memref<1xi32, #tpu.memory_space<smem>>
    %12 = tpu.assume_multiple %11, 8 : i32
    %13 = arith.index_cast %12 : i32 to index
    %c0_7 = arith.constant 0 : index
    %14 = vector.load %arg15[%13, %c0_7] : memref<8x32xf32, #tpu.memory_space<vmem>>, vector<8x32xf32>
    %15 = arith.index_cast %12 : i32 to index
    %c0_8 = arith.constant 0 : index
    %16 = vector.load %arg16[%15, %c0_8] : memref<8x32xf32, #tpu.memory_space<vmem>>, vector<8x32xf32>
    %c8_i32 = arith.constant 8 : i32
    %17 = arith.muli %arg1, %c8_i32 : i32
    %18 = tpu.iota {dimensions = array<i32: 0>} : vector<8x8xi32>
    %19 = vector.broadcast %17 : i32 to vector<8x8xi32>
    %20 = arith.addi %19, %18 : vector<8x8xi32>
    %21 = tpu.iota {dimensions = array<i32: 1>} : vector<8x8xi32>
    %22 = vector.broadcast %12 : i32 to vector<8x8xi32>
    %23 = arith.addi %22, %21 : vector<8x8xi32>
    %24 = arith.subi %20, %23 : vector<8x8xi32>
    %25 = math.absi %24 : vector<8x8xi32>
    %c2_i32 = arith.constant 2 : i32
    %26 = vector.broadcast %c2_i32 : i32 to vector<8x8xi32>
    %27 = arith.cmpi sgt, %25, %26 : vector<8x8xi32>
    %c0_9 = arith.constant 0 : index
    %c0_10 = arith.constant 0 : index
    %c0_11 = arith.constant 0 : index
    %28 = vector.load %arg6[%c0_9, %c0_10, %c0_11] : memref<1x1x8xf32, #tpu.memory_space<vmem>>, vector<1x1x8xf32>
    %29 = vector.shape_cast %28 : vector<1x1x8xf32> to vector<1x8xf32>
    %cst_12 = arith.constant 5.000000e-01 : f32
    %30 = vector.broadcast %cst_12 : f32 to vector<1x8xf32>
    %31 = arith.cmpf ogt, %29, %30 : vector<1x8xf32>
    %32 = vector.broadcast %31 : vector<1x8xi1> to vector<8x8xi1>
    %33 = arith.ori %27, %32 : vector<8x8xi1>
    %cst_13 = arith.constant -1.000000e+04 : f32
    %cst_14 = arith.constant 0.000000e+00 : f32
    %34 = vector.broadcast %cst_13 : f32 to vector<8x8xf32>
    %35 = vector.broadcast %cst_14 : f32 to vector<8x8xf32>
    %36 = arith.select %33, %34, %35 : vector<8x8xi1>, vector<8x8xf32>
    %37 = vector.extract_strided_slice %9 {offsets = [0, 0], sizes = [8, 8], strides = [1, 1]} : vector<8x32xf32> to vector<8x8xf32>
    %38 = vector.extract_strided_slice %14 {offsets = [0, 0], sizes = [8, 8], strides = [1, 1]} : vector<8x32xf32> to vector<8x8xf32>
    %cst_15 = arith.constant dense<0.000000e+00> : vector<8x8xf32>
    %39 = tpu.matmul %37, %38, %cst_15 {dimension_numbers = #tpu.dot_dimension_numbers<[1], [1], [0], [0], [0, 0, 1, 0], [], []>} : vector<8x8xf32>, vector<8x8xf32>, vector<8x8xf32> -> vector<8x8xf32>
    %40 = arith.addf %39, %36 : vector<8x8xf32>
    %cst_16 = arith.constant dense<0xFF800000> : vector<8xf32>
    %41 = vector.multi_reduction <maximumf>, %40, %cst_16 [1] : vector<8x8xf32> to vector<8xf32>
    %42 = vector.shape_cast %41 : vector<8xf32> to vector<8x1xf32>
    %43 = vector.broadcast %42 : vector<8x1xf32> to vector<8x8xf32>
    %44 = arith.subf %40, %43 : vector<8x8xf32>
    %45 = math.exp %44 : vector<8x8xf32>
    %cst_17 = arith.constant dense<0.000000e+00> : vector<8xf32>
    %46 = vector.multi_reduction <add>, %45, %cst_17 [1] : vector<8x8xf32> to vector<8xf32>
    %47 = vector.shape_cast %46 : vector<8xf32> to vector<8x1xf32>
    %48 = tpu.reciprocal %47 {approx = true} : vector<8x1xf32> -> vector<8x1xf32>
    %49 = vector.broadcast %48 : vector<8x1xf32> to vector<8x8xf32>
    %50 = arith.mulf %45, %49 : vector<8x8xf32>
    %cst_18 = arith.constant 9.99999997E-7 : f32
    %51 = vector.broadcast %cst_18 : f32 to vector<8x8xf32>
    %52 = arith.addf %50, %51 : vector<8x8xf32>
    %c0_19 = arith.constant 0 : index
    %c0_20 = arith.constant 0 : index
    %c0_21 = arith.constant 0 : index
    %c0_22 = arith.constant 0 : index
    %53 = vector.load %arg14[%c0_19, %c0_20, %c0_21, %c0_22] : memref<1x4x8x8xf32, #tpu.memory_space<vmem>>, vector<1x1x8x8xf32>
    %54 = vector.shape_cast %53 : vector<1x1x8x8xf32> to vector<8x8xf32>
    %55 = vector.shape_cast %52 : vector<8x8xf32> to vector<1x1x8x8xf32>
    tpu.vector_store %arg14[%c0_19, %c0_20, %c0_21, %c0_22], %55 {strides = array<i32>} : memref<1x4x8x8xf32, #tpu.memory_space<vmem>>, vector<1x1x8x8xf32>,
    %56 = vector.extract_strided_slice %16 {offsets = [0, 0], sizes = [8, 8], strides = [1, 1]} : vector<8x32xf32> to vector<8x8xf32>
    %cst_23 = arith.constant dense<0.000000e+00> : vector<8x8xf32>
    %57 = tpu.matmul %52, %56, %cst_23 {dimension_numbers = #tpu.dot_dimension_numbers<[1], [0], [0], [1], [0, 0, 1, 1], [], []>} : vector<8x8xf32>, vector<8x8xf32>, vector<8x8xf32> -> vector<8x8xf32>
    %c0_24 = arith.constant 0 : index
    %c0_25 = arith.constant 0 : index
    %58 = vector.load %arg17[%c0_24, %c0_25] : memref<8x32xf32, #tpu.memory_space<vmem>>, vector<8x8xf32>
    tpu.vector_store %arg17[%c0_24, %c0_25], %57 {strides = array<i32>} : memref<8x32xf32, #tpu.memory_space<vmem>>, vector<8x8xf32>,
    %59 = vector.extract_strided_slice %9 {offsets = [0, 8], sizes = [8, 8], strides = [1, 1]} : vector<8x32xf32> to vector<8x8xf32>
    %60 = vector.extract_strided_slice %14 {offsets = [0, 8], sizes = [8, 8], strides = [1, 1]} : vector<8x32xf32> to vector<8x8xf32>
    %cst_26 = arith.constant dense<0.000000e+00> : vector<8x8xf32>
    %61 = tpu.matmul %59, %60, %cst_26 {dimension_numbers = #tpu.dot_dimension_numbers<[1], [1], [0], [0], [0, 0, 1, 0], [], []>} : vector<8x8xf32>, vector<8x8xf32>, vector<8x8xf32> -> vector<8x8xf32>
    %62 = arith.addf %61, %36 : vector<8x8xf32>
    %cst_27 = arith.constant dense<0xFF800000> : vector<8xf32>
    %63 = vector.multi_reduction <maximumf>, %62, %cst_27 [1] : vector<8x8xf32> to vector<8xf32>
    %64 = vector.shape_cast %63 : vector<8xf32> to vector<8x1xf32>
    %65 = vector.broadcast %64 : vector<8x1xf32> to vector<8x8xf32>
    %66 = arith.subf %62, %65 : vector<8x8xf32>
    %67 = math.exp %66 : vector<8x8xf32>
    %cst_28 = arith.constant dense<0.000000e+00> : vector<8xf32>
    %68 = vector.multi_reduction <add>, %67, %cst_28 [1] : vector<8x8xf32> to vector<8xf32>
    %69 = vector.shape_cast %68 : vector<8xf32> to vector<8x1xf32>
    %70 = tpu.reciprocal %69 {approx = true} : vector<8x1xf32> -> vector<8x1xf32>
    %71 = vector.broadcast %70 : vector<8x1xf32> to vector<8x8xf32>
    %72 = arith.mulf %67, %71 : vector<8x8xf32>
    %cst_29 = arith.constant 9.99999997E-7 : f32
    %73 = vector.broadcast %cst_29 : f32 to vector<8x8xf32>
    %74 = arith.addf %72, %73 : vector<8x8xf32>
    %c0_30 = arith.constant 0 : index
    %c1 = arith.constant 1 : index
    %c0_31 = arith.constant 0 : index
    %c0_32 = arith.constant 0 : index
    %75 = vector.load %arg14[%c0_30, %c1, %c0_31, %c0_32] : memref<1x4x8x8xf32, #tpu.memory_space<vmem>>, vector<1x1x8x8xf32>
    %76 = vector.shape_cast %75 : vector<1x1x8x8xf32> to vector<8x8xf32>
    %77 = vector.shape_cast %74 : vector<8x8xf32> to vector<1x1x8x8xf32>
    tpu.vector_store %arg14[%c0_30, %c1, %c0_31, %c0_32], %77 {strides = array<i32>} : memref<1x4x8x8xf32, #tpu.memory_space<vmem>>, vector<1x1x8x8xf32>,
    %78 = vector.extract_strided_slice %16 {offsets = [0, 8], sizes = [8, 8], strides = [1, 1]} : vector<8x32xf32> to vector<8x8xf32>
    %cst_33 = arith.constant dense<0.000000e+00> : vector<8x8xf32>
    %79 = tpu.matmul %74, %78, %cst_33 {dimension_numbers = #tpu.dot_dimension_numbers<[1], [0], [0], [1], [0, 0, 1, 1], [], []>} : vector<8x8xf32>, vector<8x8xf32>, vector<8x8xf32> -> vector<8x8xf32>
    %c0_34 = arith.constant 0 : index
    %c8 = arith.constant 8 : index
    %80 = vector.load %arg17[%c0_34, %c8] : memref<8x32xf32, #tpu.memory_space<vmem>>, vector<8x8xf32>
    tpu.vector_store %arg17[%c0_34, %c8], %79 {strides = array<i32>} : memref<8x32xf32, #tpu.memory_space<vmem>>, vector<8x8xf32>,
    %81 = vector.extract_strided_slice %9 {offsets = [0, 16], sizes = [8, 8], strides = [1, 1]} : vector<8x32xf32> to vector<8x8xf32>
    %82 = vector.extract_strided_slice %14 {offsets = [0, 16], sizes = [8, 8], strides = [1, 1]} : vector<8x32xf32> to vector<8x8xf32>
    %cst_35 = arith.constant dense<0.000000e+00> : vector<8x8xf32>
    %83 = tpu.matmul %81, %82, %cst_35 {dimension_numbers = #tpu.dot_dimension_numbers<[1], [1], [0], [0], [0, 0, 1, 0], [], []>} : vector<8x8xf32>, vector<8x8xf32>, vector<8x8xf32> -> vector<8x8xf32>
    %84 = arith.addf %83, %36 : vector<8x8xf32>
    %cst_36 = arith.constant dense<0xFF800000> : vector<8xf32>
    %85 = vector.multi_reduction <maximumf>, %84, %cst_36 [1] : vector<8x8xf32> to vector<8xf32>
    %86 = vector.shape_cast %85 : vector<8xf32> to vector<8x1xf32>
    %87 = vector.broadcast %86 : vector<8x1xf32> to vector<8x8xf32>
    %88 = arith.subf %84, %87 : vector<8x8xf32>
    %89 = math.exp %88 : vector<8x8xf32>
    %cst_37 = arith.constant dense<0.000000e+00> : vector<8xf32>
    %90 = vector.multi_reduction <add>, %89, %cst_37 [1] : vector<8x8xf32> to vector<8xf32>
    %91 = vector.shape_cast %90 : vector<8xf32> to vector<8x1xf32>
    %92 = tpu.reciprocal %91 {approx = true} : vector<8x1xf32> -> vector<8x1xf32>
    %93 = vector.broadcast %92 : vector<8x1xf32> to vector<8x8xf32>
    %94 = arith.mulf %89, %93 : vector<8x8xf32>
    %cst_38 = arith.constant 9.99999997E-7 : f32
    %95 = vector.broadcast %cst_38 : f32 to vector<8x8xf32>
    %96 = arith.addf %94, %95 : vector<8x8xf32>
    %c0_39 = arith.constant 0 : index
    %c2 = arith.constant 2 : index
    %c0_40 = arith.constant 0 : index
    %c0_41 = arith.constant 0 : index
    %97 = vector.load %arg14[%c0_39, %c2, %c0_40, %c0_41] : memref<1x4x8x8xf32, #tpu.memory_space<vmem>>, vector<1x1x8x8xf32>
    %98 = vector.shape_cast %97 : vector<1x1x8x8xf32> to vector<8x8xf32>
    %99 = vector.shape_cast %96 : vector<8x8xf32> to vector<1x1x8x8xf32>
    tpu.vector_store %arg14[%c0_39, %c2, %c0_40, %c0_41], %99 {strides = array<i32>} : memref<1x4x8x8xf32, #tpu.memory_space<vmem>>, vector<1x1x8x8xf32>,
    %100 = vector.extract_strided_slice %16 {offsets = [0, 16], sizes = [8, 8], strides = [1, 1]} : vector<8x32xf32> to vector<8x8xf32>
    %cst_42 = arith.constant dense<0.000000e+00> : vector<8x8xf32>
    %101 = tpu.matmul %96, %100, %cst_42 {dimension_numbers = #tpu.dot_dimension_numbers<[1], [0], [0], [1], [0, 0, 1, 1], [], []>} : vector<8x8xf32>, vector<8x8xf32>, vector<8x8xf32> -> vector<8x8xf32>
    %c0_43 = arith.constant 0 : index
    %c16 = arith.constant 16 : index
    %102 = vector.load %arg17[%c0_43, %c16] : memref<8x32xf32, #tpu.memory_space<vmem>>, vector<8x8xf32>
    tpu.vector_store %arg17[%c0_43, %c16], %101 {strides = array<i32>} : memref<8x32xf32, #tpu.memory_space<vmem>>, vector<8x8xf32>,
    %103 = vector.extract_strided_slice %9 {offsets = [0, 24], sizes = [8, 8], strides = [1, 1]} : vector<8x32xf32> to vector<8x8xf32>
    %104 = vector.extract_strided_slice %14 {offsets = [0, 24], sizes = [8, 8], strides = [1, 1]} : vector<8x32xf32> to vector<8x8xf32>
    %cst_44 = arith.constant dense<0.000000e+00> : vector<8x8xf32>
    %105 = tpu.matmul %103, %104, %cst_44 {dimension_numbers = #tpu.dot_dimension_numbers<[1], [1], [0], [0], [0, 0, 1, 0], [], []>} : vector<8x8xf32>, vector<8x8xf32>, vector<8x8xf32> -> vector<8x8xf32>
    %106 = arith.addf %105, %36 : vector<8x8xf32>
    %cst_45 = arith.constant dense<0xFF800000> : vector<8xf32>
    %107 = vector.multi_reduction <maximumf>, %106, %cst_45 [1] : vector<8x8xf32> to vector<8xf32>
    %108 = vector.shape_cast %107 : vector<8xf32> to vector<8x1xf32>
    %109 = vector.broadcast %108 : vector<8x1xf32> to vector<8x8xf32>
    %110 = arith.subf %106, %109 : vector<8x8xf32>
    %111 = math.exp %110 : vector<8x8xf32>
    %cst_46 = arith.constant dense<0.000000e+00> : vector<8xf32>
    %112 = vector.multi_reduction <add>, %111, %cst_46 [1] : vector<8x8xf32> to vector<8xf32>
    %113 = vector.shape_cast %112 : vector<8xf32> to vector<8x1xf32>
    %114 = tpu.reciprocal %113 {approx = true} : vector<8x1xf32> -> vector<8x1xf32>
    %115 = vector.broadcast %114 : vector<8x1xf32> to vector<8x8xf32>
    %116 = arith.mulf %111, %115 : vector<8x8xf32>
    %cst_47 = arith.constant 9.99999997E-7 : f32
    %117 = vector.broadcast %cst_47 : f32 to vector<8x8xf32>
    %118 = arith.addf %116, %117 : vector<8x8xf32>
    %c0_48 = arith.constant 0 : index
    %c3 = arith.constant 3 : index
    %c0_49 = arith.constant 0 : index
    %c0_50 = arith.constant 0 : index
    %119 = vector.load %arg14[%c0_48, %c3, %c0_49, %c0_50] : memref<1x4x8x8xf32, #tpu.memory_space<vmem>>, vector<1x1x8x8xf32>
    %120 = vector.shape_cast %119 : vector<1x1x8x8xf32> to vector<8x8xf32>
    %121 = vector.shape_cast %118 : vector<8x8xf32> to vector<1x1x8x8xf32>
    tpu.vector_store %arg14[%c0_48, %c3, %c0_49, %c0_50], %121 {strides = array<i32>} : memref<1x4x8x8xf32, #tpu.memory_space<vmem>>, vector<1x1x8x8xf32>,
    %122 = vector.extract_strided_slice %16 {offsets = [0, 24], sizes = [8, 8], strides = [1, 1]} : vector<8x32xf32> to vector<8x8xf32>
    %cst_51 = arith.constant dense<0.000000e+00> : vector<8x8xf32>
    %123 = tpu.matmul %118, %122, %cst_51 {dimension_numbers = #tpu.dot_dimension_numbers<[1], [0], [0], [1], [0, 0, 1, 1], [], []>} : vector<8x8xf32>, vector<8x8xf32>, vector<8x8xf32> -> vector<8x8xf32>
    %c0_52 = arith.constant 0 : index
    %c24 = arith.constant 24 : index
    %124 = vector.load %arg17[%c0_52, %c24] : memref<8x32xf32, #tpu.memory_space<vmem>>, vector<8x8xf32>
    tpu.vector_store %arg17[%c0_52, %c24], %123 {strides = array<i32>} : memref<8x32xf32, #tpu.memory_space<vmem>>, vector<8x8xf32>,
    %c0_53 = arith.constant 0 : index
    %c0_54 = arith.constant 0 : index
    %125 = vector.load %arg17[%c0_53, %c0_54] : memref<8x32xf32, #tpu.memory_space<vmem>>, vector<8x32xf32>
    %c0_55 = arith.constant 0 : index
    %c0_56 = arith.constant 0 : index
    %126 = vector.load %arg11[%c0_55, %c0_56] : memref<32x32xf32, #tpu.memory_space<vmem>>, vector<32x32xf32>
    %cst_57 = arith.constant dense<0.000000e+00> : vector<8x32xf32>
    %127 = tpu.matmul %125, %126, %cst_57 {dimension_numbers = #tpu.dot_dimension_numbers<[1], [0], [0], [1], [0, 0, 1, 1], [], []>} : vector<8x32xf32>, vector<32x32xf32>, vector<8x32xf32> -> vector<8x32xf32>
    %c0_58 = arith.constant 0 : index
    %c0_59 = arith.constant 0 : index
    %128 = vector.load %arg12[%c0_58, %c0_59] : memref<1x32xf32, #tpu.memory_space<vmem>>, vector<1x32xf32>
    %129 = vector.broadcast %128 : vector<1x32xf32> to vector<8x32xf32>
    %130 = arith.addf %127, %129 : vector<8x32xf32>
    %131 = tpu.assume_multiple %17, 8 : i32
    %c0_60 = arith.constant 0 : index
    %132 = arith.index_cast %131 : i32 to index
    %c0_61 = arith.constant 0 : index
    %133 = vector.load %arg5[%c0_60, %132, %c0_61] : memref<1x8x32xf32, #tpu.memory_space<vmem>>, vector<1x8x32xf32>
    %134 = vector.shape_cast %133 : vector<1x8x32xf32> to vector<8x32xf32>
    %135 = arith.cmpf one, %130, %130 : vector<8x32xf32>
    %136 = arith.select %135, %134, %130 : vector<8x32xi1>, vector<8x32xf32>
    %c0_62 = arith.constant 0 : index
    %c0_63 = arith.constant 0 : index
    %c0_64 = arith.constant 0 : index
    %137 = vector.load %arg13[%c0_62, %c0_63, %c0_64] : memref<1x8x32xf32, #tpu.memory_space<vmem>>, vector<1x8x32xf32>
    %138 = vector.shape_cast %137 : vector<1x8x32xf32> to vector<8x32xf32>
    %139 = vector.shape_cast %136 : vector<8x32xf32> to vector<1x8x32xf32>
    tpu.vector_store %arg13[%c0_62, %c0_63, %c0_64], %139 {strides = array<i32>} : memref<1x8x32xf32, #tpu.memory_space<vmem>>, vector<1x8x32xf32>,
    return
  }
  func.func @transform_0(%arg0: i32, %arg1: i32, %arg2: memref<1xi32, #tpu.memory_space<smem>>) -> (i32, i32, i32) {
    %c0_i32 = arith.constant 0 : i32
    %c0_i32_0 = arith.constant 0 : i32
    return %arg0, %arg1, %c0_i32 : i32, i32, i32
  }
  func.func @transform_1(%arg0: i32, %arg1: i32, %arg2: memref<1xi32, #tpu.memory_space<smem>>) -> (i32, i32, i32) {
    %c0_i32 = arith.constant 0 : i32
    %c0_i32_0 = arith.constant 0 : i32
    %c0_i32_1 = arith.constant 0 : i32
    return %arg0, %c0_i32, %c0_i32_0 : i32, i32, i32
  }
  func.func @transform_2(%arg0: i32, %arg1: i32, %arg2: memref<1xi32, #tpu.memory_space<smem>>) -> (i32, i32, i32) {
    %c0_i32 = arith.constant 0 : i32
    %c0_i32_0 = arith.constant 0 : i32
    %c0_i32_1 = arith.constant 0 : i32
    return %arg0, %c0_i32, %c0_i32_0 : i32, i32, i32
  }
  func.func @transform_3(%arg0: i32, %arg1: i32, %arg2: memref<1xi32, #tpu.memory_space<smem>>) -> (i32, i32, i32) {
    %c1_i32 = arith.constant 1 : i32
    %0 = arith.muli %arg0, %c1_i32 : i32
    %1 = arith.addi %0, %arg1 : i32
    %c0_i32 = arith.constant 0 : i32
    %c0_i32_0 = arith.constant 0 : i32
    %c0_i32_1 = arith.constant 0 : i32
    return %1, %c0_i32, %c0_i32_0 : i32, i32, i32
  }
  func.func @transform_4(%arg0: i32, %arg1: i32, %arg2: memref<1xi32, #tpu.memory_space<smem>>) -> (i32, i32) {
    %c0_i32 = arith.constant 0 : i32
    %c0_i32_0 = arith.constant 0 : i32
    %c0_i32_1 = arith.constant 0 : i32
    return %c0_i32, %c0_i32_0 : i32, i32
  }
  func.func @transform_5(%arg0: i32, %arg1: i32, %arg2: memref<1xi32, #tpu.memory_space<smem>>) -> (i32, i32) {
    %c0_i32 = arith.constant 0 : i32
    %c0_i32_0 = arith.constant 0 : i32
    %c0_i32_1 = arith.constant 0 : i32
    return %c0_i32, %c0_i32_0 : i32, i32
  }
  func.func @transform_6(%arg0: i32, %arg1: i32, %arg2: memref<1xi32, #tpu.memory_space<smem>>) -> (i32, i32, i32) {
    %c0_i32 = arith.constant 0 : i32
    %c0_i32_0 = arith.constant 0 : i32
    %c0_i32_1 = arith.constant 0 : i32
    %c0_i32_2 = arith.constant 0 : i32
    return %c0_i32, %c0_i32_0, %c0_i32_1 : i32, i32, i32
  }
  func.func @transform_7(%arg0: i32, %arg1: i32, %arg2: memref<1xi32, #tpu.memory_space<smem>>) -> (i32, i32, i32) {
    %c0_i32 = arith.constant 0 : i32
    %c0_i32_0 = arith.constant 0 : i32
    %c0_i32_1 = arith.constant 0 : i32
    %c0_i32_2 = arith.constant 0 : i32
    return %c0_i32, %c0_i32_0, %c0_i32_1 : i32, i32, i32
  }
  func.func @transform_8(%arg0: i32, %arg1: i32, %arg2: memref<1xi32, #tpu.memory_space<smem>>) -> (i32, i32) {
    %c0_i32 = arith.constant 0 : i32
    %c0_i32_0 = arith.constant 0 : i32
    %c0_i32_1 = arith.constant 0 : i32
    return %c0_i32, %c0_i32_0 : i32, i32
  }
  func.func @transform_9(%arg0: i32, %arg1: i32, %arg2: memref<1xi32, #tpu.memory_space<smem>>) -> (i32, i32) {
    %c0_i32 = arith.constant 0 : i32
    %c0_i32_0 = arith.constant 0 : i32
    %c0_i32_1 = arith.constant 0 : i32
    return %c0_i32, %c0_i32_0 : i32, i32
  }
  func.func @transform_10(%arg0: i32, %arg1: i32, %arg2: memref<1xi32, #tpu.memory_space<smem>>) -> (i32, i32, i32) {
    %c0_i32 = arith.constant 0 : i32
    %c0_i32_0 = arith.constant 0 : i32
    return %arg0, %arg1, %c0_i32 : i32, i32, i32
  }
  func.func @transform_11(%arg0: i32, %arg1: i32, %arg2: memref<1xi32, #tpu.memory_space<smem>>) -> (i32, i32, i32, i32) {
    %c1_i32 = arith.constant 1 : i32
    %0 = arith.muli %arg0, %c1_i32 : i32
    %1 = arith.addi %0, %arg1 : i32
    %c0_i32 = arith.constant 0 : i32
    %c0_i32_0 = arith.constant 0 : i32
    %c0_i32_1 = arith.constant 0 : i32
    %c0_i32_2 = arith.constant 0 : i32
    return %1, %c0_i32, %c0_i32_0, %c0_i32_1 : i32, i32, i32, i32
  }
}

</mosaic_0001>

<bundles_post_ra>
// kernel: tpu_custom_call.1
= control target key start
LH: loop header
LB: loop body
LE: loop exit
PB: predicated region body
PF: predicated region fallthrough
CT: control target
= control target key end

     0   :  { %s2169_s0 = inlined_call_operand.<no memory space> [shape: s32[1], index: 0, kind: input, shape index: {}]   ;;  %s2170_s1 = inlined_call_operand.hbm [shape: f32[2,8,32], index: 1, kind: input, shape index: {}]   ;;  %s2171_s2 = inlined_call_operand.hbm [shape: f32[2,8,32], index: 2, kind: input, shape index: {}]   ;;  %s2172_s3 = inlined_call_operand.hbm [shape: f32[2,8,32], index: 3, kind: input, shape index: {}]   ;;  %s2173_s4 = inlined_call_operand.vmem [shape: f32[2,1,8], index: 4, kind: input, shape index: {}]   ;;  %s2174_s5 = inlined_call_operand.hbm [shape: f32[32,32], index: 5, kind: input, shape index: {}]   ;;  %s2175_s6 = inlined_call_operand.vmem [shape: f32[1,32], index: 6, kind: input, shape index: {}]   ;;  %s2176_s7 = inlined_call_operand.hbm [shape: f32[2,32,32], index: 7, kind: input, shape index: {}]   ;;  %s2177_s8 = inlined_call_operand.vmem [shape: f32[2,1,32], index: 8, kind: input, shape index: {}]   ;;  %s2178_s9 = inlined_call_operand.hbm [shape: f32[32,32], index: 9, kind: input, shape index: {}]   ;;  %s2179_s10 = inlined_call_operand.vmem [shape: f32[1,32], index: 10, kind: input, shape index: {}]   ;;  %s2180_s11 = inlined_call_operand.hbm [shape: f32[2,8,32], index: 11, kind: output, shape index: {0}]   ;;  %s2181_s12 = inlined_call_operand.hbm [shape: f32[2,4,8,8], index: 12, kind: output, shape index: {1}]  }
   0x1   :  { %2197 = sst [smem:[#allocation34_spill]] %s2171_s2 }
   0x2   :  { %2198 = sst [smem:[#allocation35_spill]] %s2173_s4 }
   0x3   :  { %2199 = sst [smem:[#allocation36_spill]] %s2174_s5 }
   0x4   :  { %2200 = sst [smem:[#allocation37_spill]] %s2176_s7 }
   0x5   :  { %2201 = sst [smem:[#allocation38_spill]] %s2178_s9 }
   0x6   :  { %2202 = sst [smem:[#allocation39_spill]] %s2179_s10 }
   0x7   :  { %2203 = sst [smem:[#allocation40_spill]] %s2180_s11 }
   0x8   :  { %2204 = sst [smem:[#allocation41_spill]] %s2181_s12 }
   0x9   :  { %18 = sst [smem:[#allocation6]] %s2169_s0 }
   0xa   :  { %19 = vsyncpa [#allocation8], 0 }
   0xb   :  { %21 = vsyncpa [#allocation8 + $0x1], 0 }
   0xc   :  { %22 = vsyncpa [#allocation11], 0 }
   0xd   :  { %24 = vsyncpa [#allocation11 + $0x1], 0 }
   0xe   :  { %25 = vsyncpa [#allocation14], 0 }
   0xf   :  { %26 = vsyncpa [#allocation17], 0 }
  0x10   :  { %27 = vsyncpa [#allocation9], 0 }
  0x11   :  { %29 = vsyncpa [#allocation9 + $0x1], 0 }
  0x12   :  { %30 = vsyncpa [#allocation20], 0 }
  0x13   :  { %32 = vsyncpa [#allocation20 + $0x1], 0  ;;  %s1857_s23 = smov 0   ;;  %s1859_s24 = smov 0  }
  0x14   :  { %s1861_s25 = smov 0   ;;  %s1863_s26 = smov 0  }
  0x15   :  { %s1865_s27 = smov 0   ;;  %s1867_s0 = smov 0  }
  0x16 LB: > { %2205 = sst [smem:[#allocation27_spill]] %s1753_s23  ;;  %s1888_s28 = sadd.s32 4294967295, %s1773_s0   ;;  %s1773_s0 = sphi %s1867_s0, %s38_s0   ;;  %s1769_s27 = sphi %s1865_s27, %s2236_s27   ;;  %s1765_s26 = sphi %s1863_s26, %s2235_s26   ;;  %s1761_s25 = sphi %s1861_s25, %s2239_s25   ;;  %s1757_s24 = sphi %s1859_s24, %s2238_s24   ;;  %s1753_s23 = sphi %s1857_s23, %s2237_s23  }
  0x17   : > { %2206 = sst [smem:[#allocation28_spill]] %s1769_s27  ;;  %p1280_p0 = scmp.ge.s32.totalorder %s1773_s0, 1 }
  0x18   : > { %2207 = sst [smem:[#allocation29_spill]] %s1773_s0  ;;  %p73_p1 = scmp.eq.s32.totalorder %s1888_s28, 0 }
  0x19   : > { %p345_p2 = scmp.lt.s32.totalorder %s1773_s0, 3  ;;  %s2208_s5 = sld [smem:[#allocation36_spill]] }
  0x1a   : > { %s1775_s15 = smov [#allocation13]   ;;  %p1284_p6 = scmp.ge.s32.totalorder %s1773_s0, 2 }
  0x1b   : > { %p1896_p3 = pnand %p1280_p0, %p345_p2  ;;  %s358_s16 = sshll.u32 %s1775_s15, 4  ;;  %s359_s16 = int_to_ptr.vmem [resolvable:$true] %s358_s16 }
  0x1c   : > { %s2182_s18 = smov 128   ;;  %s2184_s19 = smov 8  }
  0x1d   : > { %p1350_p4 = pneg %p1896_p3  ;;  %s1279_s20 = sadd.s32 4294967294, %s1773_s0  }
  0x1e   : > { %s50_s21 = sadd.s32 1, %s1769_s27  ;;  %s59_s22 = sadd.s32 1, %s1761_s25 }
  0x1f   : > { %s356_s13 = sshll.u32 %s2208_s5, 4  ;;  %p1904_p5 = pnand %p1350_p4, %p73_p1  ;;  %s357_s13 = int_to_ptr.hbm [resolvable:$true] %s356_s13 }
  0x20   : > { %p52_p7 = scmp.ge.s32.totalorder %s50_s21, 2  ;;  %p66_p8 = scmp.ne.s32.totalorder %s1761_s25, %s1757_s24 }
  0x21   : > { %1353 = dma.hbm_to_vmem [thread:$0]  (!%p1904_p5), %s357_s13, 512, %s359_s16, [#allocation14], %s2182_s18, %s2182_s18, %s2184_s19  }
  0x22   : > { %p67_p9 = scmp.eq.s32.totalorder %s1773_s0, 0  ;;  %p72_p10 = scmp.ne.s32.totalorder %s1757_s24, %s1753_s23 }
  0x23   : > { %s2241_s21 = smov (%p52_p7, %s50_s21), 0  ;;  %p304_p13 = scmp.eq.s32.totalorder %s1888_s28, 1 }
  0x24   : > { %2211 = sst [smem:[#allocation30_spill]] %s2241_s21  ;;  %p1924_p11 = por %p67_p9, %p66_p8 }
  0x25   : > { %p1930_p12 = por %p73_p1, %p72_p10  ;;  %s54_s13 = ssub.s32 %s1769_s27, %s2241_s21 }
  0x26   : > { %p57_p0 = scmp.eq.s32.totalorder %s54_s13, 0  ;;  %p310_p2 = scmp.eq.s32.totalorder %s1279_s20, 1 }
  0x27   : > { %p1937_p4 = por %p304_p13, %p66_p8  ;;  %p1380_p7 = scmp.lt.s32.totalorder %s1773_s0, 2 }
  0x28   : > { %s1943_s16 = scalar_select %p57_p0, %s1761_s25, %s59_s22  }
  0x29   : > { %s2214_s15 = scalar_select %p1937_p4, 1, 0 }
  0x2a   : > { %2216 = sst [smem:[#allocation32_spill]] %s1943_s16  ;;  %p1945_p9 = por %p310_p2, %p72_p10 }
  0x2b   : > { %2215 = sst [smem:[#allocation31_spill]] %s2214_s15  ;;  %s2190_s19 = sand.u32 1, %s1761_s25  }
  0x2c   : > { %s2217_s18 = scalar_select %p1945_p9, 1, 0 }
  0x2d   : > { %s1952_s5 = sshll.u32 %s2190_s19, 3  ;;  %s1955_s21 = sshll.u32 %s1769_s27, 3 }
  0x2e   : > { %2218 = sst [smem:[#allocation33_spill]] %s2217_s18  ;;  %p1959_p8 = pnand %p1380_p7, %p1924_p11 }
  0x2f   : > { %s429_s22 = sand.u32 1, %s1773_s0   ;;  %s2220_s2 = sld [smem:[#allocation34_spill]] }
  0x30   : > { %s433_s11 = scalar_lea.vmem [#allocation10], %s1952_s5  ;;  %s1969_s29 = scalar_lea.sflag [#allocation11], %s429_s22 }
  0x31   : > { %s441_s19 = sshll.u32 %s433_s11, 4  ;;  %s2221_s7 = sld [smem:[#allocation37_spill]]  ;;  %s442_s19 = int_to_ptr.vmem [resolvable:$true] %s441_s19 }
  0x32   : > { %s1778_s16 = smov [#allocation15]   ;;  %s2222_s9 = sld [smem:[#allocation38_spill]] }
  0x33   : > { %s2223_s22 = smov 8   ;;  %s2224_s12 = smov 128  }
  0x34   : > { %s1779_s10 = smov [#allocation16]   ;;  %s413_s11 = scalar_lea.vmem [#allocation7], %s1952_s5 }
  0x35   : > { %s437_s18 = scalar_lea.hbm %s2220_s2, %s1955_s21  ;;  %s422_s13 = sshll.u32 %s413_s11, 4  ;;  %s423_s13 = int_to_ptr.vmem [resolvable:$true] %s422_s13 }
  0x36   : > { %s439_s23 = sshll.u32 %s437_s18, 4  ;;  %s375_s18 = sshll.u32 %s1778_s16, 4  ;;  %s440_s23 = int_to_ptr.hbm [resolvable:$true] %s439_s23  ;;  %s376_s18 = int_to_ptr.vmem [resolvable:$true] %s375_s18 }
  0x37   : > { %1366 = dma.hbm_to_vmem [thread:$0]  (!%p1959_p8), %s440_s23, 128, %s442_s19, %s1969_s29  }
  0x38   : > { %s373_s0 = sshll.u32 %s2221_s7, 4  ;;  %s390_s2 = sshll.u32 %s2222_s9, 4  ;;  %s374_s0 = int_to_ptr.hbm [resolvable:$true] %s373_s0  ;;  %s391_s2 = int_to_ptr.hbm [resolvable:$true] %s390_s2 }
  0x39   : > { %1356 = dma.hbm_to_vmem [thread:$0]  (!%p1904_p5), %s374_s0, 1024, %s376_s18, [#allocation14], %s2224_s12, %s2224_s12, %s2223_s22  }
  0x3a   : > { %s392_s23 = sshll.u32 %s1779_s10, 4  ;;  %s418_s16 = scalar_lea.hbm %s2170_s1, %s1955_s21  ;;  %s393_s23 = int_to_ptr.vmem [resolvable:$true] %s392_s23 }
  0x3b   : > { %1359 = dma.hbm_to_vmem [thread:$0]  (!%p1904_p5), %s391_s2, 512, %s393_s23, [#allocation17], %s2224_s12, %s2224_s12, %s2223_s22  }
  0x3c   : > { %s420_s7 = sshll.u32 %s418_s16, 4  ;;  %s2225_s0 = sand.u32 1, %s1761_s25   ;;  %s421_s7 = int_to_ptr.hbm [resolvable:$true] %s420_s7 }
  0x3d   : > { %s410_s18 = scalar_lea.sflag [#allocation8], %s2225_s0  ;;  %s456_s9 = scalar_lea.hbm %s2172_s3, %s1955_s21 }
  0x3e   : > { %1363 = dma.hbm_to_vmem [thread:$0]  (!%p1959_p8), %s421_s7, 128, %s423_s13, %s410_s18  }
  0x3f   : > { %s452_s15 = scalar_lea.vmem [#allocation12], %s1952_s5  ;;  %s458_s2 = sshll.u32 %s456_s9, 4  ;;  %s459_s2 = int_to_ptr.hbm [resolvable:$true] %s458_s2 }
  0x40   : > { %s460_s4 = sshll.u32 %s452_s15, 4  ;;  %477 = sbr.rel (%p1896_p3) target bundleno = 1132 (0x46c), region = 60  ;;  %s461_s4 = int_to_ptr.vmem [resolvable:$true] %s460_s4 }
  0x41   : > { %1369 = dma.hbm_to_vmem [thread:$0]  (!%p1959_p8), %s459_s2, 128, %s461_s4, %s1969_s29  }
  0x42   : > { %s2010_s12 = sand.u32 (!%p1896_p3), 1, %s1757_s24  }
  0x43   : > { %s2013_s7 = sshll.u32 (!%p1896_p3), %s2010_s12, 3  ;;  %s480_s21 = scalar_lea.sflag (!%p1896_p3), [#allocation8], %s2010_s12 }
  0x44   : > { %s483_s5 = scalar_lea.vmem (!%p1896_p3), [#allocation7], %s2013_s7 }
  0x45   : > { %1728 = dma.done.wait (%p1930_p12), %s480_s21, 128  }
  0x46   : > { %1730 = vsyncadd (%p1930_p12), %s480_s21, 4294967168  ;;  %s489_s4 = sand.u32 1, %s1888_s28   ;;  %s493_s14 = scalar_lea.vmem [#allocation10], %s2013_s7 }
  0x47   : > { %s490_s9 = scalar_lea.sflag [#allocation11], %s489_s4 }
  0x48   : > { %1732 = dma.done.wait (%p1930_p12), %s490_s9, 256  }
  0x49   : > { %1734 = vsyncadd (%p1930_p12), %s490_s9, 4294967040  ;;  %s503_s15 = scalar_lea.vmem [#allocation12], %s2013_s7 }
  0x4a   : > { %1736 = dma.done.wait (%p73_p1), [#allocation14], 1536  }
  0x4b   : > { %1738 = vsyncadd (%p73_p1), [#allocation14], 4294965760 }
  0x4c   : > { %1740 = dma.done.wait (%p73_p1), [#allocation17], 512  }
  0x4d   : > { %1742 = vsyncadd (%p73_p1), [#allocation17], 4294966784  ;;  %v591_v0 = vld [vmem:[#allocation15 + $0x18] sm:$0xff]  ;;  %v590_v1 = vld [vmem:[#allocation15 + $0x10] sm:$0xff]  ;;  %vm596_vm0 = vcmask 261120   ;;  %s2041_s20 = sld [smem:[#allocation6]]  ;;  %v695_v17 = vlaneseq }
  0x4e   : > { %612 = vmatpush.msra.mxu0 %v591_v0  ;;  %v660_v2 = vld [vmem:[#allocation13 + $0x18] sm:$0xff]  ;;  %v589_v3 = vld [vmem:[#allocation15 + $0x8] sm:$0xff]  ;;  %v659_v4 = vld [vmem:[#allocation13 + $0x10] sm:$0xff]  ;;  %vm715_vm1 = vcmask 64512   ;;  %s1780_s27 = smov 104   ;;  %s1781_s19 = smov 120  }
  0x4f   : > { %681 = vmatpush.msra.mxu2 %v660_v2  ;;  %v588_v5 = vld [vmem:[#allocation15] sm:$0xff]  ;;  %v658_v6 = vld [vmem:[#allocation13 + $0x8] sm:$0xff]  ;;  %v656_v9 = vld [vmem:[%s483_s5] sm:$0xff]  ;;  %s1782_s16 = smov 112   ;;  %p578_p1 = scmp.lt.s32.totalorder %s1765_s26, 1  ;;  %v700_v18 = vand.u32 127, %v695_v17 }
  0x50   : > { %613 = vmatpush.msra.mxu0 %v590_v1  ;;  %v587_v7 = vld [vmem:[%s493_s14] sm:$0xff]  ;;  %v1447_v10 = vld [vmem:[%s2177_s8] ss:$0 sm:$0xff]  ;;  %s2226_s18 = sld [smem:[#allocation35_spill]]  ;;  %v696_v20 = vshrl.u32 %v695_v17, 7  ;;  %v1783_v28 = vmov 0  }
  0x51   : > { %682 = vmatpush.msra.mxu2 %v659_v4  ;;  %v657_v8 = vld [vmem:[#allocation13] sm:$0xff]  ;;  %v1448_v13 = vld [vmem:[%s2175_s6] ss:$0 sm:$0xff]  ;;  %s579_s11 = scalar_select %p578_p1, %s1765_s26, 1  ;;  %v1784_v35 = vmov 0.0   ;;  %v625_v41 = vld [vmem:[#allocation15 + $0x30] sm:$0xff] }
  0x52   : > { %614 = vmatpush.msra.mxu0 %v589_v3  ;;  %v626_v40 = vld [vmem:[#allocation15 + $0x38] sm:$0xff]  ;;  %v624_v42 = vld [vmem:[#allocation15 + $0x28] sm:$0xff]  ;;  %v623_v43 = vld [vmem:[#allocation15 + $0x20] sm:$0xff]  ;;  %s1299_s5 = sshll.u32 %s2010_s12, 5  ;;  %s1785_s9 = smov 16   ;;  %vm852_vm7 = vcmask 130112  }
  0x53   : > { %683 = vmatpush.msra.mxu2 %v658_v6  ;;  %s690_s23 = scalar_lea.vmem [#allocation2], %s2041_s20  ;;  %v701_v19 = vstv %s2041_s20  ;;  %647 = vmatpush.msra.mxu1 %v626_v40  ;;  %v2071_v44 = vld [vmem:[%s503_s15] sm:$0xff]  ;;  %s692_s21 = scalar_lea.vmem [#allocation3], %s2041_s20  ;;  %v1003_v40 = vld [vmem:[#allocation16] sm:$0xff]  ;;  %vm926_vm8 = vcmask 195712   ;;  %vm1000_vm9 = vcmask 261312  }
  0x54   : > { %615 = vmatpush.msra.mxu0 %v588_v5  ;;  %v702_v21 = vadd.s32 %v701_v19, %v700_v18  ;;  %v1449_v59 = vld [vmem:[%s2177_s8 + $0x1] ss:$0 sm:$0xff]  ;;  %s2087_s4 = scalar_lea.vmem [#allocation19], %s1299_s5  ;;  %s1786_s14 = smov 8  }
  0x55   : > { %1300 = vmatmul.msk.f32.vlgmr.msra.gmra.mxu0 %vm596_vm0, %v587_v7  ;;  %684 = vmatpush.msra.mxu2 %v657_v8  ;;  %s1787_s15 = smov 24   ;;  %s1327_s30 = sshll.u32 %s1765_s26, 5 }
  0x56   : > { %1303 = vmatmul.msk.f32.vlgmr.msra.gmra.mxu2 %vm596_vm0, %v656_v9  ;;  %s580_s17 = scalar_lea.vmem %s2226_s18, %s579_s11  ;;  %v703_v26 = vsub.s32 %v696_v20, %v702_v21  ;;  %648 = vmatpush.msra.mxu1 %v625_v41  ;;  %s2228_s22 = sld [smem:[#allocation41_spill]] }
  0x57   : > { %v708_v23 = vld [vmem:[%s580_s17] sm:$0x1] }
  0x58   : > { %vm709_vm2 = vcmp.gt.f32.partialorder %v708_v23, 0.5  ;;  %v705_v27 = vsub.s32 0, %v703_v26  ;;  %vm704_vm3 = vcmp.lt.s32.totalorder %v703_v26, 0  ;;  %649 = vmatpush.msra.mxu1 %v624_v42 }
  0x59   : > { %v710_v29 = vsel %vm709_vm2, 1, %v1783_v28 }
  0x5a   : > { %v711_v32 = vperm.slane %v710_v29, 0  ;;  %v706_v33 = vsel %vm704_vm3, %v705_v27, %v703_v26  ;;  %650 = vmatpush.msra.mxu1 %v623_v43 }
  0x5b   : > { %vm707_vm4 = vcmp.gt.s32.totalorder %v706_v33, 2  ;;  %1302 = vmatmul.msk.f32.vlgmr.msra.gmra.mxu1 %vm596_vm0, %v2071_v44 }
  0x5c   : > { %vm712_vm5 = vcmp.eq.s32.totalorder %v711_v32, 1  ;;  %s1667_s17 = scalar_lea.hbm %s2228_s22, 64 }
  0x5d   : > { %vm713_vm6 = vmor %vm707_vm4, %vm712_vm5 }
  0x5e   : > { %v714_v36 = vsel %vm713_vm6, -10000.0, %v1784_v35 }
  0xd2   : > { %v617_v11 = vpop.f32.mrf.mxu0 }
  0xd3   : > { %v618_v12 = vadd.f32 %v1447_v10, %v617_v11 }
  0xd5   : > { %620 = vst.msk [vmem:[#allocation2] sm:$0xff] %vm596_vm0, %v618_v12 }
  0xd8   : > { %v652_v60 = vpop.f32.mrf.mxu1 }
  0xd9   : > { %v686_v14 = vpop.f32.mrf.mxu2  ;;  %v653_v61 = vadd.f32 %v1449_v59, %v652_v60 }
  0xda   : > { %v687_v16 = vadd.f32 %v1448_v13, %v686_v14 }
  0xdb   : > { %655 = vst.msk [vmem:[#allocation3] sm:$0xff] %vm596_vm0, %v653_v61 }
  0xdc   : > { %v691_v15 = vld [vmem:[%s690_s23] sm:$0xff]  ;;  %s1072_s23 = scalar_lea.hbm %s2228_s22, %s1327_s30 }
  0xdd   : > { %930 = vrot.lane.b32.xlu2 %v691_v15, %s1780_s27  ;;  %781 = vrot.lane.b32.xlu1 %v691_v15, %s1781_s19 }
  0xde   : > { %856 = vrot.lane.b32.xlu0 %v691_v15, %s1782_s16  ;;  %1304 = vmatpush.xpose.msk.msra.mxu3 %vm715_vm1, %v691_v15 }
  0xe1   : > { %1305 = vmatmul.msk.f32.vlgmr.msra.gmra.mxu3 %vm715_vm1, %v687_v16 }
  0xe2   : > { %v693_v62 = vld [vmem:[%s692_s21] sm:$0xff] }
  0xe3   : > { %773 = vmatpush.msrb.mxu3 %v693_v62 }
  0xe5   : > { %928 = vrot.lane.b32.xlu2 %v687_v16, %s1780_s27  ;;  %779 = vrot.lane.b32.xlu1 %v687_v16, %s1781_s19 }
  0xe6   : > { %854 = vrot.lane.b32.xlu0 %v687_v16, %s1782_s16 }
 0x137   : > { %v931_v24 = vpop.permute.xlu2 %930 }
 0x13f   : > { %v929_v34 = vpop.permute.xlu2 %928 }
 0x14f   : > { %v782_v22 = vpop.permute.xlu1 %781 }
 0x150   : > { %v857_v25 = vpop.permute.xlu0 %856  ;;  %1307 = vmatpush.xpose.msk.msrb.mxu0 %vm715_vm1, %v782_v22 }
 0x151   : > { %1311 = vmatpush.xpose.msk.msrb.mxu2 %vm715_vm1, %v857_v25 }
 0x154   : > { %1315 = vmatpush.xpose.msk.msra.mxu0 %vm715_vm1, %v931_v24 }
 0x157   : > { %v780_v30 = vpop.permute.xlu1 %779 }
 0x158   : > { %v855_v31 = vpop.permute.xlu0 %854  ;;  %1308 = vmatmul.msk.f32.vlgmr.msrb.gmra.mxu0 %vm715_vm1, %v780_v30 }
 0x159   : > { %1312 = vmatmul.msk.f32.vlgmr.msrb.gmra.mxu2 %vm715_vm1, %v855_v31 }
 0x160   : > { %1316 = vmatmul.msk.f32.vlgmr.msra.gmra.mxu0 %vm715_vm1, %v929_v34 }
 0x164   : > { %v739_v37 = vpop.f32.mrf.mxu3 }
 0x165   : > { %v740_v38 = vadd.f32 %v739_v37, %v714_v36  ;;  %v1006_v37 = vld [vmem:[#allocation16 + $0x18] sm:$0xff] }
 0x166   : > { %1026 = vmatpush.msra.mxu2 %v1006_v37 }
 0x167   : > { %v742_v39 = vsel %vm715_vm1, %v740_v38, -inf }
 0x168   : > { %743 = vmax.xlane.f32.xlu0 %v742_v39  ;;  %v1004_v39 = vld [vmem:[#allocation16 + $0x8] sm:$0xff] }
 0x1d5   : > { %v804_v45 = vpop.f32.mrf.mxu0 }
 0x1d6   : > { %v805_v46 = vadd.f32 %v804_v45, %v714_v36 }
 0x1d8   : > { %v807_v47 = vsel %vm715_vm1, %v805_v46, -inf }
 0x1d9   : > { %808 = vmax.xlane.f32.xlu1 %v807_v47 }
 0x1db   : > { %v744_v48 = vpop.xlane.xlu0 %743 }
 0x1dc   : > { %v745_v49 = vsub.f32 %v740_v38, %v744_v48  ;;  %v879_v50 = vpop.f32.mrf.mxu2  ;;  %v1005_v38 = vld [vmem:[#allocation16 + $0x10] sm:$0xff] }
 0x1dd   : > { %v880_v51 = vadd.f32 %v879_v50, %v714_v36  ;;  %v953_v54 = vpop.f32.mrf.mxu0  ;;  %1027 = vmatpush.msra.mxu2 %v1005_v38 }
 0x1de   : > { %v746_v52 = vmul.f32 1.442695, %v745_v49  ;;  %v954_v55 = vadd.f32 %v953_v54, %v714_v36 }
 0x1df   : > { %v882_v53 = vsel %vm715_vm1, %v880_v51, -inf  ;;  %1028 = vmatpush.msra.mxu2 %v1004_v39 }
 0x1e0   : > { %1451 = vpow2.f32 %v746_v52  ;;  %883 = vmax.xlane.f32.xlu2 %v882_v53  ;;  %v956_v57 = vsel %vm715_vm1, %v954_v55, -inf }
 0x1e1   : > { %1029 = vmatpush.msra.mxu2 %v1003_v40 }
 0x1e6   : > { %v1452_v56 = vpop.eup %1451 }
 0x1e7   : > { %v748_v58 = vsel %vm715_vm1, %v1452_v56, 0.0 }
 0x1e8   : > { %957 = vmax.xlane.f32.xlu2 %v956_v57  ;;  %749 = vadd.xlane.f32.xlu0 %v748_v58 }
 0x24c   : > { %v809_v63 = vpop.xlane.xlu1 %808 }
 0x24d   : > { %v810_v0 = vsub.f32 %v805_v46, %v809_v63 }
 0x24f   : > { %v811_v1 = vmul.f32 1.442695, %v810_v0 }
 0x251   : > { %1453 = vpow2.f32 %v811_v1 }
 0x253   : > { %v884_v2 = vpop.xlane.xlu2 %883 }
 0x254   : > { %v885_v3 = vsub.f32 %v880_v51, %v884_v2 }
 0x256   : > { %v886_v4 = vmul.f32 1.442695, %v885_v3 }
 0x257   : > { %v1454_v5 = vpop.eup %1453 }
 0x258   : > { %1455 = vpow2.f32 %v886_v4  ;;  %v813_v6 = vsel %vm715_vm1, %v1454_v5, 0.0 }
 0x259   : > { %814 = vadd.xlane.f32.xlu1 %v813_v6 }
 0x25b   : > { %v958_v7 = vpop.xlane.xlu2 %957  ;;  %v750_v8 = vpop.xlane.xlu0 %749 }
 0x25c   : > { %v959_v9 = vsub.f32 %v954_v55, %v958_v7  ;;  %1457 = vrcp.f32 %v750_v8 }
 0x25e   : > { %v1456_v10 = vpop.eup %1455  ;;  %v960_v11 = vmul.f32 1.442695, %v959_v9 }
 0x25f   : > { %v888_v12 = vsel %vm715_vm1, %v1456_v10, 0.0 }
 0x260   : > { %1459 = vpow2.f32 %v960_v11  ;;  %889 = vadd.xlane.f32.xlu2 %v888_v12 }
 0x262   : > { %v1458_v13 = vpop.eup %1457 }
 0x263   : > { %v752_v14 = vmul.f32 %v1458_v13, %v1452_v56 }
 0x265   : > { %v753_v15 = vadd.f32 1e-06, %v752_v14 }
 0x266   : > { %v1460_v16 = vpop.eup %1459 }
 0x267   : > { %754 = vst.msk [vmem:[%s2087_s4] sm:$0xff] %vm715_vm1, %v753_v15  ;;  %1306 = vmatmul.msk.f32.vlgmr.msrb.gmra.mxu3 %vm715_vm1, %v753_v15  ;;  %v962_v17 = vsel %vm715_vm1, %v1460_v16, 0.0 }
 0x268   : > { %963 = vadd.xlane.f32.xlu0 %v962_v17 }
 0x272   : > { %822 = vrot.lane.b32.xlu1 %v693_v62, %s1781_s19  ;;  %s1075_s19 = sshll.u32 %s1072_s23, 4  ;;  %s1076_s19 = int_to_ptr.hbm [resolvable:$true] %s1075_s19 }
 0x273   : > { %s1661_s11 = sshra.s32 %s1076_s19, 4  ;;  %s1662_s11 = int_to_ptr.hbm [resolvable:$true] %s1661_s11 }
 0x274   : > { %s1663_s13 = scalar_lea.hbm %s1662_s11, 32  ;;  %p1668_p11 = scmp.lt.s32.totalorder %s1662_s11, %s2228_s22 }
 0x275   : > { %p1664_p3 = scmp.ne.s32.totalorder %s1662_s11, %s1663_s13  ;;  %p1669_p12 = scmp.lt.s32.totalorder %s1667_s17, %s1663_s13 }
 0x277   : > { %p1665_p5 = pnand %p1664_p3, %p1937_p4  ;;  %p1670_p13 = por %p1669_p12, %p1668_p11 }
 0x278   : > { %896 = vrot.lane.b32.xlu2 %v693_v62, %s1782_s16  ;;  %s1045_s16 = scalar_lea.sflag [#allocation20], %s2010_s12 }
 0x279   : > { %p1666_p10 = pneg %p1665_p5 }
 0x27b   : > { %p1671_p0 = pnand %p1670_p13, %p1666_p10 }
 0x27c   : > { %970 = vrot.lane.b32.xlu0 %v693_v62, %s1780_s27  ;;  %s1073_s27 = sshll.u32 %s2087_s4, 4  ;;  %s1074_s27 = int_to_ptr.vmem [resolvable:$true] %s1073_s27 }
 0x2cc   : > { %v815_v18 = vpop.xlane.xlu1 %814 }
 0x2cd   : > { %1461 = vrcp.f32 %v815_v18 }
 0x2d3   : > { %v1462_v19 = vpop.eup %1461  ;;  %v890_v20 = vpop.xlane.xlu2 %889 }
 0x2d4   : > { %v817_v21 = vmul.f32 %v1462_v19, %v1454_v5  ;;  %1463 = vrcp.f32 %v890_v20 }
 0x2d6   : > { %v818_v22 = vadd.f32 1e-06, %v817_v21 }
 0x2d8   : > { %1309 = vst.msk [vmem:[%s2087_s4 + $0x8] sm:$0xff] %vm715_vm1, %v818_v22 }
 0x2da   : > { %v1464_v23 = vpop.eup %1463 }
 0x2db   : > { %v892_v24 = vmul.f32 %v1464_v23, %v1456_v10  ;;  %v897_v25 = vpop.permute.xlu2 %896  ;;  %v964_v26 = vpop.xlane.xlu0 %963 }
 0x2dc   : > { %1465 = vrcp.f32 %v964_v26  ;;  %917 = vmatpush.msra.mxu3 %v897_v25 }
 0x2dd   : > { %v893_v27 = vadd.f32 1e-06, %v892_v24 }
 0x2df   : > { %1313 = vst.msk [vmem:[%s2087_s4 + $0x10] sm:$0xff] %vm715_vm1, %v893_v27  ;;  %1314 = vmatmul.msk.f32.vlgmr.msra.gmra.mxu3 %vm715_vm1, %v893_v27 }
 0x2e2   : > { %v1466_v28 = vpop.eup %1465 }
 0x2e3   : > { %v966_v29 = vmul.f32 %v1466_v28, %v1460_v16 }
 0x2e4   : > { %v823_v30 = vpop.permute.xlu1 %822 }
 0x2e5   : > { %v967_v31 = vadd.f32 1e-06, %v966_v29  ;;  %843 = vmatpush.msrb.mxu1 %v823_v30 }
 0x2e6   : > { %1310 = vmatmul.msk.f32.vlgmr.msrb.gmra.mxu1 %vm715_vm1, %v818_v22 }
 0x2e7   : > { %1317 = vst.msk [vmem:[%s2087_s4 + $0x18] sm:$0xff] %vm715_vm1, %v967_v31 }
 0x2ea   : > { %v775_v32 = vpop.f32.mrf.mxu3 }
 0x2eb   : > { %778 = vst.msk [vmem:[#allocation4] sm:$0xff] %vm715_vm1, %v775_v32 }
 0x2ee   : > { %v971_v33 = vpop.permute.xlu0 %970 }
 0x2ef   : > { %991 = vmatpush.msra.mxu1 %v971_v33 }
 0x2f0   : > { %1318 = vmatmul.msk.f32.vlgmr.msra.gmra.mxu1 %vm715_vm1, %v967_v31 }
 0x362   : > { %v919_v34 = vpop.f32.mrf.mxu3 }
 0x363   : > { %923 = vrot.lane.b32.xlu0 %v919_v34, %s1785_s9  ;;  %v845_v35 = vpop.f32.mrf.mxu1 }
 0x364   : > { %849 = vrot.lane.b32.xlu1 %v845_v35, %s1786_s14 }
 0x36d   : > { %v993_v36 = vpop.f32.mrf.mxu1 }
 0x36e   : > { %997 = vrot.lane.b32.xlu2 %v993_v36, %s1787_s15 }
 0x3c8   : > { %v998_v43 = vpop.permute.xlu2 %997 }
 0x3d5   : > { %v924_v42 = vpop.permute.xlu0 %923 }
 0x3d6   : > { %v850_v41 = vpop.permute.xlu1 %849 }
 0x3d7   : > { %853 = vst.msk [vmem:[#allocation4] sm:$0xff] %vm852_vm7, %v850_v41 }
 0x3d8   : > { %927 = vst.msk [vmem:[#allocation4] sm:$0xff] %vm926_vm8, %v924_v42 }
 0x3d9   : > { %1001 = vst.msk [vmem:[#allocation4] sm:$0xff] %vm1000_vm9, %v998_v43 }
 0x3e0   : > { %v1002_v45 = vld [vmem:[#allocation4] sm:$0xff] }
 0x3e1   : > { %1319 = vmatmul.msk.f32.vlgmr.msra.gmra.mxu2 %vm596_vm0, %v1002_v45 }
 0x3e2   : > { %1674 = shalt.err (!%p1671_p0)
}
 0x3e3   : > { %s1788_s21 = smov 128   ;;  %s1322_s5 = sshll.u32 %s1765_s26, 3 }
 0x3e4   : > { %1347 = dma.vmem_to_hbm [thread:$0]  (%p1937_p4), %s1074_s27, 512, %s1076_s19, %s1045_s16, %s1788_s21, %s1788_s21, %s1786_s14  }
 0x3e5   : > { %s2229_s15 = sld [smem:[#allocation39_spill]]  ;;  %s569_s11 = scalar_lea.vmem [#allocation18], %s2013_s7 }
 0x3e6   : > { %s2230_s29 = sld [smem:[#allocation40_spill]]  ;;  %s1058_s13 = sshll.u32 %s569_s11, 4  ;;  %s1059_s13 = int_to_ptr.vmem [resolvable:$true] %s1058_s13 }
 0x3e7   : > { %s1040_s26 = scalar_lea.sflag [#allocation9], %s2010_s12 }
 0x3eb   : > { %v1450_v46 = vld [vmem:[%s2229_s15] ss:$0 sm:$0xff] }
 0x3ec   : > { %s1056_s23 = scalar_lea.hbm %s2230_s29, %s1322_s5  ;;  %s1695_s16 = scalar_lea.hbm %s2230_s29, 16 }
 0x3ed   : > { %s1060_s0 = sshll.u32 %s1056_s23, 4  ;;  %s1061_s0 = int_to_ptr.hbm [resolvable:$true] %s1060_s0 }
 0x3ee   : > { %s1689_s14 = sshra.s32 %s1061_s0, 4  ;;  %s1690_s14 = int_to_ptr.hbm [resolvable:$true] %s1689_s14 }
 0x3ef   : > { %s1691_s27 = scalar_lea.hbm %s1690_s14, 8  ;;  %p1696_p1 = scmp.lt.s32.totalorder %s1690_s14, %s2230_s29 }
 0x3f0   : > { %p1692_p2 = scmp.ne.s32.totalorder %s1690_s14, %s1691_s27  ;;  %p1697_p3 = scmp.lt.s32.totalorder %s1695_s16, %s1691_s27 }
 0x3f2   : > { %p1693_p7 = pnand %p1692_p2, %p1937_p4  ;;  %p1698_p5 = por %p1697_p3, %p1696_p1 }
 0x3f4   : > { %p1694_p8 = pneg %p1693_p7 }
 0x3f6   : > { %p1699_p10 = pnand %p1698_p5, %p1694_p8 }
 0x464   : > { %v1031_v47 = vpop.f32.mrf.mxu2 }
 0x465   : > { %v1032_v48 = vadd.f32 %v1450_v46, %v1031_v47 }
 0x467   : > { %vm1036_vm10 = vcmp.ne.f32.partialorder %v1032_v48, %v1032_v48 }
 0x468   : > { %v1037_v49 = vsel %vm1036_vm10, %v2071_v44, %v1032_v48 }
 0x469   : > { %1038 = vst.msk [vmem:[%s569_s11] sm:$0xff] %vm596_vm0, %v1037_v49 }
 0x46a   : > { %1702 = shalt.err (!%p1699_p10)
}
 0x46b   : > { %1346 = dma.vmem_to_hbm [thread:$0]  (%p1937_p4), %s1059_s13, 128, %s1061_s0, %s1040_s26  }
 0x46c PF: > { %s2231_s12 = sld [smem:[#allocation27_spill]]  ;;  %p1371_p11 = pnand %p1284_p6, %p1945_p9 }
 0x46d   : > { %s2233_s2 = sld [smem:[#allocation29_spill]] }
 0x46e   : > { %p1372_p12 = pneg %p1371_p11 }
 0x472   : > { %s1090_s21 = sand.u32 1, %s2231_s12  }
 0x473   : > { %s1091_s5 = scalar_lea.sflag [#allocation9], %s1090_s21 }
 0x474   : > { %1744 = dma.done.wait (%p1372_p12), %s1091_s5, 128  }
 0x475   : > { %1746 = vsyncadd (%p1372_p12), %s1091_s5, 4294967168  ;;  %s1101_s4 = scalar_lea.sflag [#allocation20], %s1090_s21 }
 0x476   : > { %1748 = dma.done.wait (%p1372_p12), %s1101_s4, 512  }
 0x477   : > { %1750 = vsyncadd (%p1372_p12), %s1101_s4, 4294966784  ;;  %s38_s0 = sadd.s32 1, %s2233_s2   ;;  %s2234_s28 = sld [smem:[#allocation32_spill]] }
 0x478   : > { %p35_p13 = scmp.ge.s32.totalorder %s38_s0, 4   ;;  %s2235_s26 = sld [smem:[#allocation28_spill]] }
 0x479   : > { %s2236_s27 = sld [smem:[#allocation30_spill]]  ;;  %s2237_s23 = smov %s1757_s24 }
 0x47a   : > { %s2238_s24 = smov %s1761_s25  ;;  %37 = sbr.rel (!%p35_p13) target bundleno = 22 (0x16), region = 173 }
 0x47d   : > { %s2239_s25 = smov %s2234_s28 }
 0x47f   :  { %1107 = vsyncpa [#allocation8], 1 }
 0x480   :  { %1109 = vsyncpa [#allocation8 + $0x1], 1 }
 0x481   :  { %1110 = vsyncpa [#allocation11], 1 }
 0x482   :  { %1112 = vsyncpa [#allocation11 + $0x1], 1 }
 0x483   :  { %1113 = vsyncpa [#allocation14], 1 }
 0x484   :  { %1114 = vsyncpa [#allocation17], 1 }
 0x485   :  { %1115 = vsyncpa [#allocation9], 1 }
 0x486   :  { %1117 = vsyncpa [#allocation9 + $0x1], 1 }
 0x487   :  { %1118 = vsyncpa [#allocation20], 1 }
 0x488   :  { %1120 = vsyncpa [#allocation20 + $0x1], 1 }

</bundles_post_ra>
